<compile_context>
chip_gen: v7x
topology: tpu7x:2x2x1
jax: 0.10.0
libtpu: 0.0.40
codegen_flags: <defaults>
</compile_context>

<pallas_src>
import jax
import jax.numpy as jnp
from jax.experimental import pallas as pl
from jax.experimental.pallas import tpu as pltpu


# ----------------------------- Pallas kernel ---------------------------------

def moe_kernel(x_ref, w_ref, b_ref, o_ref):
    # x_ref : (ts, D_in)     compute dtype   token tile of one batch element
    # w_ref : (D_in, D_out)  compute dtype   gate-folded weight (pre-transposed)
    # b_ref : (1, D_out)     f32             gate-folded bias for this batch
    # o_ref : (ts, D_out)    x.dtype
    y = jnp.dot(x_ref[...], w_ref[...], preferred_element_type=jnp.float32)
    o_ref[...] = (y + b_ref[...]).astype(o_ref.dtype)


def moe_pallas(x, w_t, bias, *, ts, out_dtype):
    B, S, D_in = x.shape
    D_out = w_t.shape[-1]
    return pl.pallas_call(
        moe_kernel,
        out_shape=jax.ShapeDtypeStruct((B, S, D_out), out_dtype),
        grid_spec=pltpu.PrefetchScalarGridSpec(
            num_scalar_prefetch=0,
            grid=(B, S // ts),
            in_specs=[
                # x: one (ts, D) token tile of batch b (batch dim squeezed).
                pl.BlockSpec((None, ts, D_in), lambda b, s: (b, s, 0)),
                # gate-folded weight for batch b, constant across S tiles.
                pl.BlockSpec((None, D_in, D_out), lambda b, s: (b, 0, 0)),
                # gate-folded bias for batch b, constant across S tiles.
                pl.BlockSpec((None, 1, D_out), lambda b, s: (b, 0, 0)),
            ],
            out_specs=pl.BlockSpec((None, ts, D_out), lambda b, s: (b, s, 0)),
        ),
        compiler_params=pltpu.CompilerParams(
            dimension_semantics=("parallel", "parallel")),
    )(x, w_t, bias)


# ------------------------------ JAX glue --------------------------------------

def init_params(key, expert_dim, num_experts, adapt_dim):
    ks = jax.random.split(key, 6)
    D, E, A = expert_dim, num_experts, adapt_dim
    return {
        # AdaptiveLinear base params (torch.randn init): (out, in) per expert
        "expert_w": jax.random.normal(ks[0], (E, D, D), jnp.float32),
        "expert_b": jax.random.normal(ks[1], (E, D), jnp.float32),
        # AdaptiveLinear.adapt : Linear(adapt_dim -> D*D)
        "adapt_w": jax.random.uniform(ks[2], (E, D * D, A), jnp.float32, -0.1, 0.1),
        "adapt_b": jax.random.uniform(ks[3], (E, D * D), jnp.float32, -0.1, 0.1),
        # gating : Linear(adapt_dim -> num_experts)
        "gating_w": jax.random.uniform(ks[4], (E, A), jnp.float32, -0.1, 0.1),
        "gating_b": jax.random.uniform(ks[5], (E,), jnp.float32, -0.1, 0.1),
    }


def mixture_of_experts_forward(params, x, adapt_input, *, compute_dtype=jnp.bfloat16):
    B, S, D = x.shape
    E = params["expert_w"].shape[0]

    # ---- gating: softmax(Linear(adapt_input)) ----
    logits = adapt_input @ params["gating_w"].T + params["gating_b"]
    gate = jax.nn.softmax(logits, axis=-1)                           # (B, E)

    # ---- adaptive weight deltas (shared across batch: mean over dim 0) ----
    z = adapt_input.mean(axis=0)                                     # (A,)
    adapt_flat = jnp.einsum("eka,a->ek", params["adapt_w"], z) + params["adapt_b"]
    w_eff = params["expert_w"] + adapt_flat.reshape(E, D, D)         # (E, out, in)

    # ---- fold the per-batch gate into weights/bias (linearity):
    #   x @ W_comb[b]^T + b_comb[b] == sum_e g[b,e] * (x @ W_eff[e]^T + b_e)
    # Transposed so the kernel does x @ w (no in-kernel transpose).
    w_comb_t = jnp.einsum("be,eoi->bio", gate, w_eff)                # (B, in, out)
    b_comb = (gate @ params["expert_b"]).reshape(B, 1, D)            # (B, 1, out)

    # ---- S tiling: full S per step when it fits; 1024-row tiles beyond that.
    if S <= 1024:
        ts, s_pad = S, S           # full-dim block: always a legal block shape
    else:
        ts = 1024
        s_pad = -(-S // ts) * ts

    x_k = x
    if s_pad != S:
        x_k = jnp.pad(x_k, ((0, 0), (0, s_pad - S), (0, 0)))

    out = moe_pallas(
        x_k.astype(compute_dtype),
        w_comb_t.astype(compute_dtype),
        b_comb.astype(jnp.float32),
        ts=ts,
        out_dtype=x.dtype,
    )
    return out[:, :S, :]


def mixture_of_experts_reference(params, x, adapt_input):
    # Pure-JAX reference mirroring the PyTorch module exactly (f32 throughout).
    logits = adapt_input @ params["gating_w"].T + params["gating_b"]
    gate = jax.nn.softmax(logits, axis=-1)
    z = adapt_input.mean(axis=0)
    E, D, _ = params["expert_w"].shape
    out = jnp.zeros_like(x)
    for e in range(E):
        A = (params["adapt_w"][e] @ z + params["adapt_b"][e]).reshape(D, D)
        W = params["expert_w"][e] + A
        y = x @ W.T + params["expert_b"][e]
        out = out + gate[:, e][:, None, None] * y
    return out


# --------------------------------- main ---------------------------------------

if __name__ == "__main__":
    B, S = 2, 8                # batch, sequence
    expert_dim = 32
    num_experts = 4
    adapt_dim = 16

    key = jax.random.PRNGKey(0)
    kp, kx, ka = jax.random.split(key, 3)
    params = init_params(kp, expert_dim, num_experts, adapt_dim)
    x = jax.random.normal(kx, (B, S, expert_dim), jnp.float32)
    adapt_input = jax.random.normal(ka, (B, adapt_dim), jnp.float32)

    ref = mixture_of_experts_reference(params, x, adapt_input)

    # Default perf path: bf16 matmul operands, f32 accumulation.
    out_bf16 = jax.block_until_ready(mixture_of_experts_forward(params, x, adapt_input))
    assert out_bf16.shape == (B, S, expert_dim)
    assert jnp.allclose(out_bf16, ref, atol=1e-1, rtol=5e-2), "bf16 path mismatch vs reference"

    # f32-operand path: tighter tolerance guards against layout/fold bugs that
    # loose bf16 tolerances could mask.
    out_f32 = jax.block_until_ready(
        mixture_of_experts_forward(params, x, adapt_input, compute_dtype=jnp.float32))
    assert jnp.allclose(out_f32, ref, atol=1e-2, rtol=1e-2), "f32 path mismatch vs reference"

    print("KERNEL_OK")
</pallas_src>

<mosaic_0001>
module attributes {stable_mosaic.version = 11 : i64} {
  func.func @moe_kernel(%arg0: i32, %arg1: i32, %arg2: memref<1x8x32xbf16, #tpu.memory_space<vmem>>, %arg3: memref<1x32x32xbf16, #tpu.memory_space<vmem>>, %arg4: memref<1x1x32xf32, #tpu.memory_space<vmem>>, %arg5: memref<1x8x32xf32, #tpu.memory_space<vmem>>) attributes {dimension_semantics = [#tpu.dimension_semantics<parallel>, #tpu.dimension_semantics<parallel>], iteration_bounds = array<i64: 2, 1>, scalar_prefetch = 0 : i64, scratch_operands = 0 : i64, tpu.core_type = #tpu.core_type<tc>, window_params = [{transform_indices = @transform_0, window_bounds = array<i64: 1, 8, 32>}, {transform_indices = @transform_1, window_bounds = array<i64: 1, 32, 32>}, {transform_indices = @transform_2, window_bounds = array<i64: 1, 1, 32>}, {transform_indices = @transform_3, window_bounds = array<i64: 1, 8, 32>}]} {
    %c0 = arith.constant 0 : index
    %c0_0 = arith.constant 0 : index
    %c0_1 = arith.constant 0 : index
    %0 = vector.load %arg2[%c0, %c0_0, %c0_1] : memref<1x8x32xbf16, #tpu.memory_space<vmem>>, vector<1x8x32xbf16>
    %1 = vector.shape_cast %0 : vector<1x8x32xbf16> to vector<8x32xbf16>
    %c0_2 = arith.constant 0 : index
    %c0_3 = arith.constant 0 : index
    %c0_4 = arith.constant 0 : index
    %2 = vector.load %arg3[%c0_2, %c0_3, %c0_4] : memref<1x32x32xbf16, #tpu.memory_space<vmem>>, vector<1x32x32xbf16>
    %3 = vector.shape_cast %2 : vector<1x32x32xbf16> to vector<32x32xbf16>
    %cst = arith.constant dense<0.000000e+00> : vector<8x32xf32>
    %4 = tpu.matmul %1, %3, %cst {dimension_numbers = #tpu.dot_dimension_numbers<[1], [0], [0], [1], [0, 0, 1, 1], [], []>} : vector<8x32xbf16>, vector<32x32xbf16>, vector<8x32xf32> -> vector<8x32xf32>
    %c0_5 = arith.constant 0 : index
    %c0_6 = arith.constant 0 : index
    %c0_7 = arith.constant 0 : index
    %5 = vector.load %arg4[%c0_5, %c0_6, %c0_7] : memref<1x1x32xf32, #tpu.memory_space<vmem>>, vector<1x1x32xf32>
    %6 = vector.shape_cast %5 : vector<1x1x32xf32> to vector<1x32xf32>
    %7 = vector.broadcast %6 : vector<1x32xf32> to vector<8x32xf32>
    %8 = arith.addf %4, %7 : vector<8x32xf32>
    %c0_8 = arith.constant 0 : index
    %c0_9 = arith.constant 0 : index
    %c0_10 = arith.constant 0 : index
    %9 = vector.load %arg5[%c0_8, %c0_9, %c0_10] : memref<1x8x32xf32, #tpu.memory_space<vmem>>, vector<1x8x32xf32>
    %10 = vector.shape_cast %9 : vector<1x8x32xf32> to vector<8x32xf32>
    %11 = vector.shape_cast %8 : vector<8x32xf32> to vector<1x8x32xf32>
    tpu.vector_store %arg5[%c0_8, %c0_9, %c0_10], %11 {strides = array<i32>} : memref<1x8x32xf32, #tpu.memory_space<vmem>>, vector<1x8x32xf32>,
    return
  }
  func.func @transform_0(%arg0: i32, %arg1: i32) -> (i32, i32, i32) {
    %c0_i32 = arith.constant 0 : i32
    %c0_i32_0 = arith.constant 0 : i32
    return %arg0, %arg1, %c0_i32 : i32, i32, i32
  }
  func.func @transform_1(%arg0: i32, %arg1: i32) -> (i32, i32, i32) {
    %c0_i32 = arith.constant 0 : i32
    %c0_i32_0 = arith.constant 0 : i32
    %c0_i32_1 = arith.constant 0 : i32
    return %arg0, %c0_i32, %c0_i32_0 : i32, i32, i32
  }
  func.func @transform_2(%arg0: i32, %arg1: i32) -> (i32, i32, i32) {
    %c0_i32 = arith.constant 0 : i32
    %c0_i32_0 = arith.constant 0 : i32
    %c0_i32_1 = arith.constant 0 : i32
    return %arg0, %c0_i32, %c0_i32_0 : i32, i32, i32
  }
  func.func @transform_3(%arg0: i32, %arg1: i32) -> (i32, i32, i32) {
    %c0_i32 = arith.constant 0 : i32
    %c0_i32_0 = arith.constant 0 : i32
    return %arg0, %arg1, %c0_i32 : i32, i32, i32
  }
}

</mosaic_0001>

<bundles_post_ra>
// kernel: tpu_custom_call.1
= control target key start
LH: loop header
LB: loop body
LE: loop exit
PB: predicated region body
PF: predicated region fallthrough
CT: control target
= control target key end

     0   :  { %8 = vsyncpa [#allocation3], 0  ;;  %s966_s0 = inlined_call_operand.hbm [shape: bf16[2,8,32], index: 0, kind: input, shape index: {}]   ;;  %s967_s1 = inlined_call_operand.hbm [shape: bf16[2,32,32], index: 1, kind: input, shape index: {}]   ;;  %s968_s2 = inlined_call_operand.vmem [shape: f32[2,1,32], index: 2, kind: input, shape index: {}]   ;;  %s969_s3 = inlined_call_operand.hbm [shape: f32[2,8,32], index: 3, kind: output, shape index: {}]  }
   0x1   :  { %10 = vsyncpa [#allocation3 + $0x1], 0 }
   0x2   :  { %11 = vsyncpa [#allocation6], 0 }
   0x3   :  { %13 = vsyncpa [#allocation6 + $0x1], 0 }
   0x4   :  { %14 = vsyncpa [#allocation4], 0 }
   0x5   :  { %16 = vsyncpa [#allocation4 + $0x1], 0  ;;  %s735_s12 = smov 0   ;;  %s737_s13 = smov 0  }
   0x6   :  { %s739_s14 = smov 0   ;;  %s741_s15 = smov 0  }
   0x7   :  { %s743_s16 = smov 0   ;;  %s745_s17 = smov 0  }
   0x8 LB: > { %s454_s18 = sadd.s32 4294967295, %s706_s17   ;;  %s455_s19 = sadd.s32 4294967294, %s706_s17   ;;  %s706_s17 = sphi %s745_s17, %s22_s17   ;;  %s702_s16 = sphi %s743_s16, %s988_s16   ;;  %s698_s15 = sphi %s741_s15, %s987_s15   ;;  %s694_s14 = sphi %s739_s14, %s986_s14   ;;  %s690_s13 = sphi %s737_s13, %s985_s13   ;;  %s686_s12 = sphi %s735_s12, %s984_s12  }
   0x9   : > { %s34_s20 = sadd.s32 1, %s702_s16  ;;  %s43_s21 = sadd.s32 1, %s694_s14 }
   0xa   : > { %p36_p0 = scmp.ge.s32.totalorder %s34_s20, 2  ;;  %p50_p1 = scmp.ne.s32.totalorder %s694_s14, %s690_s13 }
   0xb   : > { %p51_p2 = scmp.eq.s32.totalorder %s706_s17, 0  ;;  %p56_p3 = scmp.ne.s32.totalorder %s690_s13, %s686_s12 }
   0xc   : > { %s990_s20 = smov (%p36_p0, %s34_s20), 0  ;;  %p57_p5 = scmp.eq.s32.totalorder %s454_s18, 0 }
   0xd   : > { %p776_p4 = por %p51_p2, %p50_p1  ;;  %s38_s23 = ssub.s32 %s702_s16, %s990_s20 }
   0xe   : > { %p134_p6 = scmp.eq.s32.totalorder %s454_s18, 1  ;;  %p41_p7 = scmp.eq.s32.totalorder %s38_s23, 0 }
   0xf   : > { %p782_p8 = por %p57_p5, %p56_p3  ;;  %p140_p10 = scmp.eq.s32.totalorder %s455_s19, 1 }
  0x10   : > { %p786_p9 = por %p134_p6, %p50_p1  ;;  %p504_p13 = scmp.lt.s32.totalorder %s706_s17, 2 }
  0x11   : > { %s973_s24 = scalar_select %p782_p8, 1, 0 }
  0x12   : > { %s974_s25 = scalar_select %p786_p9, 1, 0 }
  0x13   : > { %s791_s26 = scalar_select %p41_p7, %s694_s14, %s43_s21  }
  0x14   : > { %p793_p11 = por %p140_p10, %p56_p3  ;;  %s800_s28 = sand.u32 1, %s694_s14  }
  0x15   : > { %s458_s29 = sshll.u32 %s800_s28, 2  ;;  %s459_s30 = sshll.u32 %s702_s16, 6 }
  0x16   : > { %s975_s27 = scalar_select %p793_p11, 1, 0 }
  0x17   : > { %s807_s6 = scalar_lea.hbm %s966_s0, %s459_s30  ;;  %s164_s7 = scalar_lea.vmem [#allocation2], %s458_s29 }
  0x18   : > { %s172_s8 = sshll.u32 %s164_s7, 4  ;;  %p813_p0 = pnand %p504_p13, %p776_p4  ;;  %s809_s8 = int_to_ptr.vmem [resolvable:$true] %s172_s8 }
  0x19   : > { %s161_s10 = scalar_lea.sflag [#allocation3], %s800_s28  ;;  %s560_s11 = scalar_lea.hbm %s807_s6, 64 }
  0x1a   : > { %p561_p3 = scmp.ne.s32.totalorder %s807_s6, %s560_s11  ;;  %p562_p5 = pneg %p813_p0 }
  0x1b   : > { %s565_s21 = scalar_lea.hbm %s966_s0, 128  ;;  %p566_p4 = scmp.lt.u32.totalorder %s807_s6, %s966_s0 }
  0x1c   : > { %p563_p6 = pnand %p562_p5, %p561_p3  ;;  %p567_p10 = scmp.lt.u32.totalorder %s565_s21, %s560_s11 }
  0x1d   : > { %p569_p12 = scmp.lt.u32.totalorder %s560_s11, %s807_s6 }
  0x1e   : > { %p564_p7 = pneg %p563_p6  ;;  %p568_p13 = por %p567_p10, %p566_p4 }
  0x20   : > { %p570_p1 = por %p569_p12, %p568_p13 }
  0x22   : > { %p571_p2 = pnand %p570_p1, %p564_p7 }
  0x24   : > { %574 = shalt.err (!%p571_p2)
}
  0x25   : > { %s575_s29 = scalar_lea.vmem %s809_s8, 64  ;;  %s708_s30 = smov [#allocation2]  }
  0x26   : > { %p576_p3 = scmp.ne.s32.totalorder %s809_s8, %s575_s29  ;;  %s580_s4 = sshll.u32 %s708_s30, 4  ;;  %s581_s4 = int_to_ptr.vmem [resolvable:$false] %s580_s4 }
  0x27   : > { %s582_s5 = scalar_lea.vmem %s581_s4, 128  ;;  %p583_p9 = scmp.lt.s32.totalorder %s809_s8, %s581_s4 }
  0x28   : > { %p578_p6 = pnand %p576_p3, %p562_p5  ;;  %p584_p4 = scmp.lt.s32.totalorder %s582_s5, %s575_s29 }
  0x2a   : > { %p579_p11 = pneg %p578_p6  ;;  %p585_p10 = por %p584_p4, %p583_p9 }
  0x2c   : > { %p586_p12 = pnand %p585_p10, %p579_p11 }
  0x2e   : > { %589 = shalt.err (!%p586_p12)
}
  0x2f   : > { %496 = dma.hbm_to_vmem [thread:$0]  (!%p813_p0), %s807_s6, 64, %s809_s8, %s161_s10  }
  0x30   : > { %p977_p1 = scmp.lt.s32.totalorder %s706_s17, 3  ;;  %p978_p2 = scmp.ge.s32.totalorder %s706_s17, 1 }
  0x31   : > { %s460_s11 = sshll.u32 %s800_s28, 4  ;;  %s475_s18 = sshll.u32 %s702_s16, 8 }
  0x32   : > { %p849_p7 = pnand %p978_p2, %p977_p1  ;;  %s858_s22 = scalar_lea.hbm %s967_s1, %s475_s18 }
  0x33   : > { %s183_s23 = scalar_lea.vmem [#allocation5], %s460_s11  ;;  %s180_s6 = scalar_lea.sflag [#allocation6], %s800_s28 }
  0x34   : > { %s190_s29 = sshll.u32 %s183_s23, 4  ;;  %s590_s8 = scalar_lea.hbm %s858_s22, 256  ;;  %s860_s29 = int_to_ptr.vmem [resolvable:$true] %s190_s29 }
  0x35   : > { %p591_p9 = scmp.ne.s32.totalorder %s858_s22, %s590_s8  ;;  %s595_s4 = scalar_lea.hbm %s967_s1, 512 }
  0x36   : > { %p596_p3 = scmp.lt.u32.totalorder %s858_s22, %s967_s1  ;;  %p597_p6 = scmp.lt.u32.totalorder %s595_s4, %s590_s8 }
  0x37   : > { %p593_p11 = pnand %p591_p9, %p562_p5  ;;  %p599_p10 = scmp.lt.u32.totalorder %s590_s8, %s858_s22 }
  0x38   : > { %p598_p4 = por %p597_p6, %p596_p3 }
  0x39   : > { %p594_p13 = pneg %p593_p11 }
  0x3a   : > { %p600_p12 = por %p599_p10, %p598_p4 }
  0x3c   : > { %p601_p1 = pnand %p600_p12, %p594_p13 }
  0x3e   : > { %604 = shalt.err (!%p601_p1)
}
  0x3f   : > { %s605_s11 = scalar_lea.vmem %s860_s29, 256  ;;  %s709_s19 = smov [#allocation5]  }
  0x40   : > { %p606_p2 = scmp.ne.s32.totalorder %s860_s29, %s605_s11  ;;  %s610_s21 = sshll.u32 %s709_s19, 4  ;;  %s611_s21 = int_to_ptr.vmem [resolvable:$false] %s610_s21 }
  0x41   : > { %s612_s23 = scalar_lea.vmem %s611_s21, 512  ;;  %p613_p8 = scmp.lt.s32.totalorder %s860_s29, %s611_s21 }
  0x42   : > { %p608_p9 = pnand %p606_p2, %p562_p5  ;;  %p614_p3 = scmp.lt.s32.totalorder %s612_s23, %s605_s11 }
  0x44   : > { %p609_p11 = pneg %p608_p9  ;;  %p615_p6 = por %p614_p3, %p613_p8 }
  0x46   : > { %p616_p4 = pnand %p615_p6, %p609_p11 }
  0x48   : > { %619 = shalt.err (!%p616_p4)
}
  0x49   : > { %s710_s8 = smov 64   ;;  %s711_s10 = smov 4  }
  0x4a   : > { %499 = dma.hbm_to_vmem [thread:$0]  (!%p813_p0), %s858_s22, 256, %s860_s29, %s180_s6, %s710_s8, %s710_s8, %s711_s10  }
  0x4b   : > { %208 = sbr.rel (%p849_p7) target bundleno = 323 (0x143), region = 32  ;;  %s891_s30 = sand.u32 (!%p849_p7), 1, %s690_s13  }
  0x4c   : > { %s464_s4 = sshll.u32 (!%p849_p7), %s891_s30, 2  ;;  %s211_s5 = scalar_lea.sflag (!%p849_p7), [#allocation3], %s891_s30 }
  0x4d   : > { %s214_s18 = scalar_lea.vmem (!%p849_p7), [#allocation2], %s464_s4  ;;  %p980_p8 = scmp.ne.s32.totalorder (!%p849_p7), %s973_s24, 0 }
  0x52   : > { %673 = dma.done.wait (%p980_p8), %s211_s5, 64  }
  0x53   : > { %675 = vsyncadd (%p980_p8), %s211_s5, 4294967232  ;;  %s465_s28 = sshll.u32 %s891_s30, 4  ;;  %s220_s9 = scalar_lea.sflag [#allocation6], %s891_s30 }
  0x54   : > { %s223_s7 = scalar_lea.vmem [#allocation5], %s465_s28 }
  0x55   : > { %677 = dma.done.wait (%p980_p8), %s220_s9, 256  }
  0x56   : > { %679 = vsyncadd (%p980_p8), %s220_s9, 4294967040  ;;  %v712_v0 = vmov 0.0   ;;  %vm713_vm0 = vmmov 0   ;;  %v558_v1 = vld [vmem:[%s223_s7] sm:$0xff]   ;;  %v559_v2 = vld [vmem:[%s223_s7 + $0x8] sm:$0xff]   ;;  %vm282_vm1 = vcmask 261120  }
  0x57   : > { %479 = vmatprep.subr.bf16.mxu0 %v712_v0  ;;  %483 = vmatprep.mubr.msk.bf16.mxu0 %vm713_vm0, %v712_v0  ;;  %v258_v3 = vld [vmem:[%s214_s18] sm:$0xf]  ;;  %p254_p0 = scmp.lt.s32.totalorder %s698_s15, 1  ;;  %s466_s22 = sshll.u32 %s891_s30, 3 }
  0x58   : > { %480 = vmatpush3.bf16.msra.mxu0 %v558_v1  ;;  %s472_s19 = sshll.u32 %s698_s15, 7  ;;  %s253_s21 = scalar_lea.vmem [#allocation7], %s466_s22 }
  0x59   : > { %481 = vmatprep.subr.bf16.mxu0 %v712_v0  ;;  %s255_s24 = scalar_select %p254_p0, %s698_s15, 1 }
  0x5a   : > { %s342_s23 = sshll.u32 %s253_s21, 4  ;;  %s916_s4 = scalar_lea.hbm %s969_s3, %s472_s19  ;;  %s918_s23 = int_to_ptr.vmem [resolvable:$true] %s342_s23 }
  0x5b   : > { %s256_s11 = scalar_lea.vmem %s968_s2, %s255_s24  ;;  %s328_s15 = scalar_lea.sflag [#allocation4], %s891_s30 }
  0x5c   : > { %482 = vmatpush3.bf16.msra.mxu0 %v559_v2  ;;  %v467_v4 = vld [vmem:[%s256_s11] ss:$0 sm:$0xff]  ;;  %s620_s5 = scalar_lea.vmem %s918_s23, 128  ;;  %p981_p7 = scmp.ne.s32.totalorder %s974_s25, 0 }
  0x5d   : > { %p621_p5 = scmp.ne.s32.totalorder %s918_s23, %s620_s5  ;;  %s714_s18 = smov [#allocation7]  }
  0x5e   : > { %s624_s28 = sshll.u32 %s714_s18, 4  ;;  %s625_s28 = int_to_ptr.vmem [resolvable:$false] %s624_s28 }
  0x5f   : > { %484 = vmatmul.mubr.msk.bf16.vlgmr.msra.gmra.mrb[0].mxu0 %vm282_vm1, %v258_v3  ;;  %p622_p13 = pnand %p621_p5, %p981_p7  ;;  %s626_s9 = scalar_lea.vmem %s625_s28, 256 }
  0x60   : > { %p627_p12 = scmp.lt.s32.totalorder %s918_s23, %s625_s28  ;;  %p628_p1 = scmp.lt.s32.totalorder %s626_s9, %s620_s5 }
  0x61   : > { %p623_p10 = pneg %p622_p13 }
  0x62   : > { %p629_p2 = por %p628_p1, %p627_p12 }
  0x64   : > { %p630_p9 = pnand %p629_p2, %p623_p10 }
 0x132   : > { %v320_v5 = vpop.f32.mrb[0].mxu0 }
 0x133   : > { %v321_v6 = vadd.f32 %v467_v4, %v320_v5  ;;  %v485_v7 = vpop.f32.mrb[1].mxu0 }
 0x134   : > { %v323_v8 = vpop.f32.mrb[2].mxu0 }
 0x135   : > { %v486_v9 = vpop.f32.mrb[3].mxu0  ;;  %326 = vst.msk [vmem:[%s253_s21] sm:$0xff] %vm282_vm1, %v321_v6 }
 0x136   : > { %633 = shalt.err (!%p630_p9)
}
 0x137   : > { %s634_s30 = scalar_lea.hbm %s916_s4, 128  ;;  %s638_s22 = scalar_lea.hbm %s969_s3, 256 }
 0x138   : > { %p635_p11 = scmp.ne.s32.totalorder %s916_s4, %s634_s30  ;;  %p639_p4 = scmp.lt.u32.totalorder %s916_s4, %s969_s3 }
 0x139   : > { %p640_p8 = scmp.lt.u32.totalorder %s638_s22, %s634_s30  ;;  %p642_p5 = scmp.lt.u32.totalorder %s634_s30, %s916_s4 }
 0x13a   : > { %p636_p3 = pnand %p635_p11, %p981_p7 }
 0x13b   : > { %p641_p0 = por %p640_p8, %p639_p4 }
 0x13c   : > { %p637_p6 = pneg %p636_p3 }
 0x13d   : > { %p643_p13 = por %p642_p5, %p641_p0 }
 0x13f   : > { %p644_p10 = pnand %p643_p13, %p637_p6 }
 0x141   : > { %647 = shalt.err (!%p644_p10)
}
 0x142   : > { %491 = dma.vmem_to_hbm [thread:$0]  (%p981_p7), %s918_s23, 128, %s916_s4, %s328_s15  }
 0x143 PF: > { %s354_s11 = sand.u32 1, %s686_s12   ;;  %p982_p12 = scmp.ne.s32.totalorder %s975_s27, 0 }
 0x144   : > { %p983_p1 = scmp.ge.s32.totalorder %s706_s17, 2  ;;  %s355_s19 = scalar_lea.sflag [#allocation4], %s354_s11 }
 0x146   : > { %p501_p2 = pnand %p983_p1, %p982_p12 }
 0x148   : > { %681 = dma.done.wait (!%p501_p2), %s355_s19, 128  }
 0x149   : > { %683 = vsyncadd (!%p501_p2), %s355_s19, 4294967168  ;;  %s22_s17 = sadd.s32 1, %s706_s17   ;;  %s984_s12 = smov %s690_s13 }
 0x14a   : > { %p19_p9 = scmp.ge.s32.totalorder %s22_s17, 4   ;;  %s985_s13 = smov %s694_s14 }
 0x14b   : > { %s986_s14 = smov %s791_s26  ;;  %s987_s15 = smov %s702_s16 }
 0x14c   : > { %s988_s16 = smov %s990_s20  ;;  %21 = sbr.rel (!%p19_p9) target bundleno = 8 (0x8), region = 93 }
 0x153   :  { %360 = vsyncpa [#allocation3], 1 }
 0x154   :  { %362 = vsyncpa [#allocation3 + $0x1], 1 }
 0x155   :  { %363 = vsyncpa [#allocation6], 1 }
 0x156   :  { %365 = vsyncpa [#allocation6 + $0x1], 1 }
 0x157   :  { %366 = vsyncpa [#allocation4], 1 }
 0x158   :  { %368 = vsyncpa [#allocation4 + $0x1], 1 }

</bundles_post_ra>
